<compile_context>
chip_gen: v6e
topology: v6e:2x2x1
jax: 0.10.0
libtpu: 0.0.40
codegen_flags: <defaults>
</compile_context>

<pallas_src>
import functools

import jax
import jax.numpy as jnp
from jax import lax
from jax.experimental import pallas as pl
from jax.experimental.pallas import tpu as pltpu


# ---------------------------------------------------------------------------
# Kernel
# ---------------------------------------------------------------------------
def _conv3x3_fused(v_bf16, m_ref):
    """3x3 conv (pad=1, stride=1) as ONE lane-dense MXU matmul with K = 3*W*Cin.

    v_bf16 : (B, H, W*Cin) bf16 activations for B_TILE images.
    m_ref  : (3*W*Cin, W*Cout) bf16 banded weights, row-blocks [M_kh0; M_kh1; M_kh2].
    returns (B*H, W*Cout) f32.
    """
    B, H, WC = v_bf16.shape
    zero = jnp.zeros((B, 1, WC), v_bf16.dtype)
    xp = jnp.concatenate([zero, v_bf16, zero], axis=1)            # (B, H+2, WC)
    # tap_kh[h] = xp[h + kh]  (row above / same / below, zero at image border);
    # concat along K so all three kh taps accumulate inside a single matmul.
    taps = jnp.concatenate([xp[:, 0:H], xp[:, 1:H + 1], xp[:, 2:H + 2]],
                           axis=-1)                               # (B, H, 3*WC)
    return jnp.dot(taps.reshape(B * H, 3 * WC), m_ref[...],
                   preferred_element_type=jnp.float32)


def _basic_block_kernel(x_ref, m1_ref, s1_ref, b1_ref,
                        m2_ref, s2_ref, b2_ref, out_ref):
    # x_ref / out_ref: (B_TILE, H, W*C) lane-dense block of B_TILE images.
    B, H, WC = x_ref.shape
    x_in = x_ref[...]
    x_res = x_in.reshape(B * H, WC).astype(jnp.float32)   # residual path in f32
    x_bf = x_in.astype(jnp.bfloat16)                       # single cast per conv input

    # conv1 (3x3) + bn1 + relu
    h1 = jnp.maximum(_conv3x3_fused(x_bf, m1_ref) * s1_ref[...] + b1_ref[...], 0.0)
    # conv2 (3x3) + bn2
    h1_bf = h1.astype(jnp.bfloat16).reshape(B, H, WC)
    h2 = _conv3x3_fused(h1_bf, m2_ref) * s2_ref[...] + b2_ref[...]
    # identity residual + relu
    out = jnp.maximum(h2 + x_res, 0.0)
    out_ref[...] = out.reshape(B, H, WC).astype(out_ref.dtype)


# ---------------------------------------------------------------------------
# Parameter packing (runs once, outside the kernel)
# ---------------------------------------------------------------------------
def _fold_bn(gamma, beta, mean, var, width, eps=1e-5):
    """Fold inference-mode BN into per-channel scale/bias, tiled over W (C-fastest)."""
    scale = gamma / jnp.sqrt(var + eps)
    bias = beta - mean * scale
    return (jnp.tile(scale, width).reshape(1, -1).astype(jnp.float32),
            jnp.tile(bias, width).reshape(1, -1).astype(jnp.float32))


def _band_conv3x3_weight(w_oihw, width, dtype=jnp.bfloat16):
    """OIHW (Cout, Cin, 3, 3) -> (3*W*Cin, W*Cout) fused banded matmul weights.

    Row-block kh holds M[kh][(w, ci), (w', co)] = K[co, ci, kh, (w - w') + 1]
    for |w - w'| <= 1, so all kw taps and the left/right zero padding are folded
    into the band structure, and the three kh blocks accumulate inside one MXU
    matmul against the K-concatenated row taps.
    """
    cout, cin, kh_n, _ = w_oihw.shape
    mats = []
    for kh in range(kh_n):
        m = sum(jnp.kron(jnp.eye(width, k=-dw, dtype=w_oihw.dtype),
                         w_oihw[:, :, kh, dw + 1].T)
                for dw in (-1, 0, 1))
        mats.append(m)
    return jnp.concatenate(mats, axis=0).astype(dtype)


# ---------------------------------------------------------------------------
# Wrappers
# ---------------------------------------------------------------------------
@functools.partial(jax.jit, static_argnames=("b_tile",))
def basic_block_forward_folded(x_fold, m1, s1, b1, m2, s2, b2, *, b_tile=None):
    """Production entry. x_fold: (N, H, W*Cin) lane-dense folded NHWC (f32 or bf16).

    Returns (N, H, W*Cout) in x_fold.dtype.
    """
    N, H, WC_in = x_fold.shape
    WC_out = m2.shape[1]
    assert m1.shape[0] == 3 * WC_in and WC_in == WC_out, \
        "identity residual requires Cin == Cout (stride=1, downsample=None)"

    if b_tile is None:
        # >=2 grid steps (two v7x TensorCores) while packing as many images per
        # step as possible (amortizes MXU weight loads + per-step overhead).
        b_tile = N // 2 if N >= 2 else 1
        while b_tile > 1 and N % b_tile:
            b_tile -= 1
    assert N % b_tile == 0

    def inv_spec(shape):
        # Grid-invariant operand: fetched once, single-buffered to halve its
        # VMEM footprint (frees room for bigger activation tiles).
        return pl.BlockSpec(shape, lambda n: (0,) * len(shape),
                            pipeline_mode=pl.Buffered(1))

    return pl.pallas_call(
        _basic_block_kernel,
        out_shape=jax.ShapeDtypeStruct((N, H, WC_out), x_fold.dtype),
        grid=(N // b_tile,),
        in_specs=[
            pl.BlockSpec((b_tile, H, WC_in), lambda n: (n, 0, 0)),
            inv_spec(m1.shape), inv_spec(s1.shape), inv_spec(b1.shape),
            inv_spec(m2.shape), inv_spec(s2.shape), inv_spec(b2.shape),
        ],
        out_specs=pl.BlockSpec((b_tile, H, WC_out), lambda n: (n, 0, 0)),
        compiler_params=pltpu.CompilerParams(
            dimension_semantics=("parallel",),          # feeds both TCs on v7x
            vmem_limit_bytes=48 * 1024 * 1024),          # < v7x 64 MiB physical
    )(x_fold, m1, s1, b1, m2, s2, b2)


@jax.jit
def basic_block_forward(x_nchw, m1, s1, b1, m2, s2, b2):
    """PyTorch-layout compatibility wrapper: (N, Cin, H, W) -> (N, Cout, H, W).

    NOTE: the two transposes roughly double HBM traffic around the kernel —
    production callers should stay NHWC-folded and call
    basic_block_forward_folded directly.
    """
    N, C, H, W = x_nchw.shape
    x_fold = jnp.transpose(x_nchw, (0, 2, 3, 1)).reshape(N, H, W * C)
    out = basic_block_forward_folded(x_fold, m1, s1, b1, m2, s2, b2)
    Cout = out.shape[-1] // W
    return jnp.transpose(out.reshape(N, H, W, Cout), (0, 3, 1, 2))


# ---------------------------------------------------------------------------
# Pure-JAX reference (mirrors the PyTorch BasicBlock exactly, eval-mode BN)
# ---------------------------------------------------------------------------
def _ref_conv3x3(x, w):
    return lax.conv_general_dilated(
        x, w, window_strides=(1, 1), padding=((1, 1), (1, 1)),
        dimension_numbers=("NCHW", "OIHW", "NCHW"))


def _ref_bn(x, gamma, beta, mean, var, eps=1e-5):
    inv = gamma / jnp.sqrt(var + eps)
    return (x - mean[None, :, None, None]) * inv[None, :, None, None] \
        + beta[None, :, None, None]


def reference_forward(x, w1, bn1, w2, bn2):
    out = jnp.maximum(_ref_bn(_ref_conv3x3(x, w1), *bn1), 0.0)
    out = _ref_bn(_ref_conv3x3(out, w2), *bn2)
    return jnp.maximum(out + x, 0.0)


# ---------------------------------------------------------------------------
if __name__ == "__main__":
    # BasicBlock(inplanes=8, planes=8), stride=1, downsample=None.
    # Folded last dim = W * C = 16 * 8 = 128 -> exactly one full lane tile.
    # N=8 with the default B_TILE=4 -> grid=(2,): both v7x TCs busy and
    # M = B_TILE*H = 64 rows per fused-K matmul (vs 16 in v1).
    N, planes, H, W = 8, 8, 16, 16

    key = jax.random.PRNGKey(0)
    ks = jax.random.split(key, 8)

    x = jax.random.normal(ks[0], (N, planes, H, W), jnp.float32)

    # PyTorch-style parameters (OIHW conv weights, per-channel BN stats).
    w1_pt = 0.2 * jax.random.normal(ks[1], (planes, planes, 3, 3), jnp.float32)
    w2_pt = 0.2 * jax.random.normal(ks[2], (planes, planes, 3, 3), jnp.float32)

    def bn_params(k, c):
        k1, k2, k3, k4 = jax.random.split(k, 4)
        gamma = 1.0 + 0.1 * jax.random.normal(k1, (c,), jnp.float32)
        beta = 0.1 * jax.random.normal(k2, (c,), jnp.float32)
        mean = 0.1 * jax.random.normal(k3, (c,), jnp.float32)
        var = jnp.abs(jax.random.normal(k4, (c,), jnp.float32)) + 1.0
        return gamma, beta, mean, var

    bn1 = bn_params(ks[3], planes)
    bn2 = bn_params(ks[4], planes)

    # Pack parameters for the folded lane-dense kernel.
    m1 = _band_conv3x3_weight(w1_pt, W)            # (384, 128) bf16, [kh0;kh1;kh2]
    m2 = _band_conv3x3_weight(w2_pt, W)            # (384, 128) bf16
    s1, b1 = _fold_bn(*bn1, width=W)               # (1, 128) f32
    s2, b2 = _fold_bn(*bn2, width=W)

    out = jax.block_until_ready(basic_block_forward(x, m1, s1, b1, m2, s2, b2))
    ref = jax.block_until_ready(reference_forward(x, w1_pt, bn1, w2_pt, bn2))

    assert out.shape == (N, planes, H, W)
    # Tolerance sized for bf16 MXU weights/activations (intentional: MXU-native
    # inference precision; two 3x3 convs with K = 9*C = 72 effective taps each).
    # All BN / ReLU / residual math is f32.
    max_err = float(jnp.max(jnp.abs(out - ref)))
    assert jnp.allclose(out, ref, rtol=5e-2, atol=1.5e-1), f"max abs err {max_err}"

    print("KERNEL_OK")
</pallas_src>

<mosaic_0001>
module attributes {stable_mosaic.version = 11 : i64} {
  func.func @_basic_block_kernel(%arg0: i32, %arg1: memref<4x16x128xf32, #tpu.memory_space<vmem>>, %arg2: memref<384x128xbf16, #tpu.memory_space<vmem>>, %arg3: memref<1x128xf32, #tpu.memory_space<vmem>>, %arg4: memref<1x128xf32, #tpu.memory_space<vmem>>, %arg5: memref<384x128xbf16, #tpu.memory_space<vmem>>, %arg6: memref<1x128xf32, #tpu.memory_space<vmem>>, %arg7: memref<1x128xf32, #tpu.memory_space<vmem>>, %arg8: memref<4x16x128xf32, #tpu.memory_space<vmem>>) attributes {dimension_semantics = [#tpu.dimension_semantics<parallel>], iteration_bounds = array<i64: 2>, scalar_prefetch = 0 : i64, scratch_operands = 0 : i64, tpu.core_type = #tpu.core_type<tc>, window_params = [{transform_indices = @transform_0, window_bounds = array<i64: 4, 16, 128>}, {pipeline_mode = #tpu.pipeline_mode<synchronous>, transform_indices = @transform_1, window_bounds = array<i64: 384, 128>}, {pipeline_mode = #tpu.pipeline_mode<synchronous>, transform_indices = @transform_2, window_bounds = array<i64: 1, 128>}, {pipeline_mode = #tpu.pipeline_mode<synchronous>, transform_indices = @transform_3, window_bounds = array<i64: 1, 128>}, {pipeline_mode = #tpu.pipeline_mode<synchronous>, transform_indices = @transform_4, window_bounds = array<i64: 384, 128>}, {pipeline_mode = #tpu.pipeline_mode<synchronous>, transform_indices = @transform_5, window_bounds = array<i64: 1, 128>}, {pipeline_mode = #tpu.pipeline_mode<synchronous>, transform_indices = @transform_6, window_bounds = array<i64: 1, 128>}, {transform_indices = @transform_7, window_bounds = array<i64: 4, 16, 128>}]} {
    %c0 = arith.constant 0 : index
    %c0_0 = arith.constant 0 : index
    %c0_1 = arith.constant 0 : index
    %0 = vector.load %arg1[%c0, %c0_0, %c0_1] : memref<4x16x128xf32, #tpu.memory_space<vmem>>, vector<4x16x128xf32>
    %1 = vector.shape_cast %0 : vector<4x16x128xf32> to vector<64x128xf32>
    %2 = arith.truncf %0 : vector<4x16x128xf32> to vector<4x16x128xbf16>
    %cst = arith.constant 0.000000e+00 : bf16
    %3 = vector.broadcast %cst : bf16 to vector<4x1x128xbf16>
    %4 = tpu.concatenate %3, %2, %3 in 1 : vector<4x1x128xbf16>, vector<4x16x128xbf16>, vector<4x1x128xbf16> -> vector<4x18x128xbf16>
    %5 = vector.extract_strided_slice %4 {offsets = [0, 0, 0], sizes = [4, 16, 128], strides = [1, 1, 1]} : vector<4x18x128xbf16> to vector<4x16x128xbf16>
    %6 = vector.extract_strided_slice %4 {offsets = [0, 1, 0], sizes = [4, 16, 128], strides = [1, 1, 1]} : vector<4x18x128xbf16> to vector<4x16x128xbf16>
    %7 = vector.extract_strided_slice %4 {offsets = [0, 2, 0], sizes = [4, 16, 128], strides = [1, 1, 1]} : vector<4x18x128xbf16> to vector<4x16x128xbf16>
    %8 = tpu.concatenate %5, %6, %7 in 2 : vector<4x16x128xbf16>, vector<4x16x128xbf16>, vector<4x16x128xbf16> -> vector<4x16x384xbf16>
    %9 = vector.shape_cast %8 : vector<4x16x384xbf16> to vector<64x384xbf16>
    %c0_2 = arith.constant 0 : index
    %c0_3 = arith.constant 0 : index
    %10 = vector.load %arg2[%c0_2, %c0_3] : memref<384x128xbf16, #tpu.memory_space<vmem>>, vector<384x128xbf16>
    %cst_4 = arith.constant dense<0.000000e+00> : vector<64x128xf32>
    %11 = tpu.matmul %9, %10, %cst_4 {dimension_numbers = #tpu.dot_dimension_numbers<[1], [0], [0], [1], [0, 0, 1, 1], [], []>} : vector<64x384xbf16>, vector<384x128xbf16>, vector<64x128xf32> -> vector<64x128xf32>
    %c0_5 = arith.constant 0 : index
    %c0_6 = arith.constant 0 : index
    %12 = vector.load %arg3[%c0_5, %c0_6] : memref<1x128xf32, #tpu.memory_space<vmem>>, vector<1x128xf32>
    %13 = vector.broadcast %12 : vector<1x128xf32> to vector<64x128xf32>
    %14 = arith.mulf %11, %13 : vector<64x128xf32>
    %c0_7 = arith.constant 0 : index
    %c0_8 = arith.constant 0 : index
    %15 = vector.load %arg4[%c0_7, %c0_8] : memref<1x128xf32, #tpu.memory_space<vmem>>, vector<1x128xf32>
    %16 = vector.broadcast %15 : vector<1x128xf32> to vector<64x128xf32>
    %17 = arith.addf %14, %16 : vector<64x128xf32>
    %cst_9 = arith.constant 0.000000e+00 : f32
    %18 = vector.broadcast %cst_9 : f32 to vector<64x128xf32>
    %19 = arith.maximumf %17, %18 : vector<64x128xf32>
    %20 = arith.truncf %19 : vector<64x128xf32> to vector<64x128xbf16>
    %21 = vector.shape_cast %20 : vector<64x128xbf16> to vector<4x16x128xbf16>
    %cst_10 = arith.constant 0.000000e+00 : bf16
    %22 = vector.broadcast %cst_10 : bf16 to vector<4x1x128xbf16>
    %23 = tpu.concatenate %22, %21, %22 in 1 : vector<4x1x128xbf16>, vector<4x16x128xbf16>, vector<4x1x128xbf16> -> vector<4x18x128xbf16>
    %24 = vector.extract_strided_slice %23 {offsets = [0, 0, 0], sizes = [4, 16, 128], strides = [1, 1, 1]} : vector<4x18x128xbf16> to vector<4x16x128xbf16>
    %25 = vector.extract_strided_slice %23 {offsets = [0, 1, 0], sizes = [4, 16, 128], strides = [1, 1, 1]} : vector<4x18x128xbf16> to vector<4x16x128xbf16>
    %26 = vector.extract_strided_slice %23 {offsets = [0, 2, 0], sizes = [4, 16, 128], strides = [1, 1, 1]} : vector<4x18x128xbf16> to vector<4x16x128xbf16>
    %27 = tpu.concatenate %24, %25, %26 in 2 : vector<4x16x128xbf16>, vector<4x16x128xbf16>, vector<4x16x128xbf16> -> vector<4x16x384xbf16>
    %28 = vector.shape_cast %27 : vector<4x16x384xbf16> to vector<64x384xbf16>
    %c0_11 = arith.constant 0 : index
    %c0_12 = arith.constant 0 : index
    %29 = vector.load %arg5[%c0_11, %c0_12] : memref<384x128xbf16, #tpu.memory_space<vmem>>, vector<384x128xbf16>
    %cst_13 = arith.constant dense<0.000000e+00> : vector<64x128xf32>
    %30 = tpu.matmul %28, %29, %cst_13 {dimension_numbers = #tpu.dot_dimension_numbers<[1], [0], [0], [1], [0, 0, 1, 1], [], []>} : vector<64x384xbf16>, vector<384x128xbf16>, vector<64x128xf32> -> vector<64x128xf32>
    %c0_14 = arith.constant 0 : index
    %c0_15 = arith.constant 0 : index
    %31 = vector.load %arg6[%c0_14, %c0_15] : memref<1x128xf32, #tpu.memory_space<vmem>>, vector<1x128xf32>
    %32 = vector.broadcast %31 : vector<1x128xf32> to vector<64x128xf32>
    %33 = arith.mulf %30, %32 : vector<64x128xf32>
    %c0_16 = arith.constant 0 : index
    %c0_17 = arith.constant 0 : index
    %34 = vector.load %arg7[%c0_16, %c0_17] : memref<1x128xf32, #tpu.memory_space<vmem>>, vector<1x128xf32>
    %35 = vector.broadcast %34 : vector<1x128xf32> to vector<64x128xf32>
    %36 = arith.addf %33, %35 : vector<64x128xf32>
    %37 = arith.addf %36, %1 : vector<64x128xf32>
    %cst_18 = arith.constant 0.000000e+00 : f32
    %38 = vector.broadcast %cst_18 : f32 to vector<64x128xf32>
    %39 = arith.maximumf %37, %38 : vector<64x128xf32>
    %40 = vector.shape_cast %39 : vector<64x128xf32> to vector<4x16x128xf32>
    %c0_19 = arith.constant 0 : index
    %c0_20 = arith.constant 0 : index
    %c0_21 = arith.constant 0 : index
    %41 = vector.load %arg8[%c0_19, %c0_20, %c0_21] : memref<4x16x128xf32, #tpu.memory_space<vmem>>, vector<4x16x128xf32>
    tpu.vector_store %arg8[%c0_19, %c0_20, %c0_21], %40 {strides = array<i32>} : memref<4x16x128xf32, #tpu.memory_space<vmem>>, vector<4x16x128xf32>,
    return
  }
  func.func @transform_0(%arg0: i32) -> (i32, i32, i32) {
    %c0_i32 = arith.constant 0 : i32
    %c0_i32_0 = arith.constant 0 : i32
    %c0_i32_1 = arith.constant 0 : i32
    return %arg0, %c0_i32, %c0_i32_0 : i32, i32, i32
  }
  func.func @transform_1(%arg0: i32) -> (i32, i32) {
    %c0_i32 = arith.constant 0 : i32
    %c0_i32_0 = arith.constant 0 : i32
    %c0_i32_1 = arith.constant 0 : i32
    return %c0_i32, %c0_i32_0 : i32, i32
  }
  func.func @transform_2(%arg0: i32) -> (i32, i32) {
    %c0_i32 = arith.constant 0 : i32
    %c0_i32_0 = arith.constant 0 : i32
    %c0_i32_1 = arith.constant 0 : i32
    return %c0_i32, %c0_i32_0 : i32, i32
  }
  func.func @transform_3(%arg0: i32) -> (i32, i32) {
    %c0_i32 = arith.constant 0 : i32
    %c0_i32_0 = arith.constant 0 : i32
    %c0_i32_1 = arith.constant 0 : i32
    return %c0_i32, %c0_i32_0 : i32, i32
  }
  func.func @transform_4(%arg0: i32) -> (i32, i32) {
    %c0_i32 = arith.constant 0 : i32
    %c0_i32_0 = arith.constant 0 : i32
    %c0_i32_1 = arith.constant 0 : i32
    return %c0_i32, %c0_i32_0 : i32, i32
  }
  func.func @transform_5(%arg0: i32) -> (i32, i32) {
    %c0_i32 = arith.constant 0 : i32
    %c0_i32_0 = arith.constant 0 : i32
    %c0_i32_1 = arith.constant 0 : i32
    return %c0_i32, %c0_i32_0 : i32, i32
  }
  func.func @transform_6(%arg0: i32) -> (i32, i32) {
    %c0_i32 = arith.constant 0 : i32
    %c0_i32_0 = arith.constant 0 : i32
    %c0_i32_1 = arith.constant 0 : i32
    return %c0_i32, %c0_i32_0 : i32, i32
  }
  func.func @transform_7(%arg0: i32) -> (i32, i32, i32) {
    %c0_i32 = arith.constant 0 : i32
    %c0_i32_0 = arith.constant 0 : i32
    %c0_i32_1 = arith.constant 0 : i32
    return %arg0, %c0_i32, %c0_i32_0 : i32, i32, i32
  }
}

</mosaic_0001>

<bundles_post_ra>
// kernel: basic_block_forward_folded.1
= control target key start
LH: loop header
LB: loop body
LE: loop exit
PB: predicated region body
PF: predicated region fallthrough
CT: control target
= control target key end

     0   :  { %s2334_s0 = inlined_call_operand.hbm [shape: f32[8,16,128], index: 0, kind: input, shape index: {}]   ;;  %s2335_s1 = inlined_call_operand.hbm [shape: bf16[384,128], index: 1, kind: input, shape index: {}]   ;;  %s2336_s2 = inlined_call_operand.vmem [shape: f32[1,128], index: 2, kind: input, shape index: {}]   ;;  %s2337_s3 = inlined_call_operand.vmem [shape: f32[1,128], index: 3, kind: input, shape index: {}]   ;;  %s2338_s4 = inlined_call_operand.hbm [shape: bf16[384,128], index: 4, kind: input, shape index: {}]   ;;  %s2339_s5 = inlined_call_operand.vmem [shape: f32[1,128], index: 5, kind: input, shape index: {}]   ;;  %s2340_s6 = inlined_call_operand.vmem [shape: f32[1,128], index: 6, kind: input, shape index: {}]   ;;  %s2341_s7 = inlined_call_operand.hbm [shape: f32[8,16,128], index: 7, kind: output, shape index: {}]  }
   0x1   :  { %2346 = sst [smem:[#allocation12_spill]] %s2335_s1 }
   0x2   :  { %12 = vsyncpa [#allocation3], 0 }
   0x3   :  { %14 = vsyncpa [#allocation3 + $0x1], 0 }
   0x4   :  { %15 = vsyncpa [#allocation6], 0 }
   0x5   :  { %16 = vsyncpa [#allocation4], 0 }
   0x6   :  { %18 = vsyncpa [#allocation4 + $0x1], 0  ;;  %s1983_s24 = smov 0   ;;  %s1985_s25 = smov 0  }
   0x7   :  { %s1987_s26 = smov 0   ;;  %s1989_s27 = smov 0  }
   0x8 LB: > { %s2004_s28 = sadd.s32 4294967295, %s1931_s27   ;;  %s1434_s29 = sadd.s32 4294967294, %s1931_s27   ;;  %s1931_s27 = sphi %s1989_s27, %s2367_s27   ;;  %s1927_s26 = sphi %s1987_s26, %s2366_s26   ;;  %s1923_s25 = sphi %s1985_s25, %s2365_s25   ;;  %s1919_s24 = sphi %s1983_s24, %s2364_s24  }
   0x9   : > { %p44_p0 = scmp.ne.s32.totalorder %s1923_s25, %s1919_s24  ;;  %p2342_p1 = scmp.eq.s32.totalorder %s2004_s28, 0 }
   0xa   : > { %p200_p3 = scmp.eq.s32.totalorder %s1434_s29, 1  ;;  %p1435_p5 = scmp.ge.s32.totalorder %s1931_s27, 1 }
   0xb   : > { %p2013_p4 = por %p2342_p1, %p44_p0  ;;  %p207_p7 = scmp.lt.s32.totalorder %s1931_s27, 3 }
   0xc   : > { %p2018_p6 = por %p200_p3, %p44_p0  ;;  %s1933_s10 = smov [#allocation5]  }
   0xd   : > { %s2347_s30 = scalar_select %p2013_p4, 1, 0 }
   0xe   : > { %s2348_s8 = scalar_select %p2018_p6, 1, 0 }
   0xf   : > { %p2023_p8 = pnand %p1435_p5, %p207_p7  ;;  %s219_s11 = sshll.u32 %s1933_s10, 4  ;;  %s220_s11 = int_to_ptr.vmem [resolvable:$true] %s219_s11 }
  0x10   : > { %s1934_s13 = smov [#allocation7]   ;;  %s1794_s15 = scalar_lea.vmem %s220_s11, 3072 }
  0x11   : > { %s2349_s9 = scalar_select %p2023_p8, 1, 0 }
  0x12   : > { %p1674_p9 = pneg %p2023_p8  ;;  %s238_s14 = sshll.u32 %s1934_s13, 4  ;;  %s239_s14 = int_to_ptr.vmem [resolvable:$true] %s238_s14 }
  0x13   : > { %p1795_p13 = scmp.ne.s32.totalorder %s220_s11, %s1794_s15  ;;  %p1802_p5 = scmp.lt.s32.totalorder %s220_s11, %s220_s11 }
  0x14   : > { %p2032_p11 = pnand %p1674_p9, %p2342_p1  ;;  %p1803_p7 = scmp.lt.s32.totalorder %s1794_s15, %s1794_s15 }
  0x16   : > { %p1785_p12 = pneg %p2032_p11  ;;  %p1804_p10 = por %p1803_p7, %p1802_p5 }
  0x18   : > { %p1797_p0 = pnand %p1795_p13, %p1785_p12 }
  0x1a   : > { %p1798_p3 = pneg %p1797_p0 }
  0x1c   : > { %p1805_p9 = pnand %p1804_p10, %p1798_p3 }
  0x1e   : > { %1808 = shalt.err (!%p1805_p9)
}
  0x1f   : > { %s1935_s16 = smov 64   ;;  %s1936_s17 = smov 4  }
  0x20   : > { %s2351_s1 = sld [smem:[#allocation12_spill]]  ;;  %s1820_s20 = scalar_lea.vmem %s239_s14, 3072 }
  0x21   : > { %p1821_p1 = scmp.ne.s32.totalorder %s239_s14, %s1820_s20  ;;  %p1828_p2 = scmp.lt.s32.totalorder %s239_s14, %s239_s14 }
  0x22   : > { %p1829_p6 = scmp.lt.s32.totalorder %s1820_s20, %s1820_s20 }
  0x23   : > { %p1823_p13 = pnand %p1821_p1, %p1785_p12 }
  0x24   : > { %p1830_p5 = por %p1829_p6, %p1828_p2 }
  0x25   : > { %p1824_p0 = pneg %p1823_p13 }
  0x26   : > { %1677 = dma.hbm_to_vmem [thread:$0]  (!%p2032_p11), %s2351_s1, 3072, %s220_s11, [#allocation6], %s1935_s16, %s1935_s16, %s1936_s17  }
  0x27   : > { %p1831_p10 = pnand %p1830_p5, %p1824_p0 }
  0x29   : > { %1834 = shalt.err (!%p1831_p10)
}
  0x2a   : > { %1680 = dma.hbm_to_vmem [thread:$0]  (!%p2032_p11), %s2338_s4, 3072, %s239_s14, [#allocation6], %s1935_s16, %s1935_s16, %s1936_s17  }
  0x2b   : > { %s2055_s23 = sadd.s32 1, %s1931_s27   ;;  %s31_s29 = sadd.s32 1, %s1927_s26 }
  0x2c   : > { %s28_s10 = ssub.s32 %s1931_s27, %s2055_s23  ;;  %p38_p1 = scmp.ne.s32.totalorder %s1927_s26, %s1923_s25 }
  0x2d   : > { %p29_p2 = scmp.eq.s32.totalorder %s28_s10, 0  ;;  %p39_p6 = scmp.eq.s32.totalorder %s1931_s27, 0 }
  0x2e   : > { %p2352_p12 = scmp.eq.s32.totalorder %s2004_s28, 1  ;;  %p1691_p7 = scmp.lt.s32.totalorder %s1931_s27, 2 }
  0x2f   : > { %s2071_s12 = scalar_select %p29_p2, %s1927_s26, %s31_s29  }
  0x30   : > { %p2065_p3 = por %p2352_p12, %p38_p1  ;;  %p40_p9 = por %p39_p6, %p38_p1 }
  0x31   : > { %s258_s13 = sand.u32 1, %s1927_s26   ;;  %s1507_s14 = sshll.u32 %s1931_s27, 10 }
  0x32   : > { %s2353_s11 = scalar_select %p2065_p3, 1, 0 }
  0x33   : > { %s1439_s15 = sshll.u32 %s258_s13, 6  ;;  %s2078_s18 = scalar_lea.hbm %s2334_s0, %s1507_s14 }
  0x34   : > { %s262_s19 = scalar_lea.vmem [#allocation2], %s1439_s15  ;;  %p2082_p11 = pnand %p1691_p7, %p40_p9 }
  0x35   : > { %s270_s20 = sshll.u32 %s262_s19, 4  ;;  %s2086_s22 = scalar_lea.sflag [#allocation3], %s258_s13  ;;  %s2080_s20 = int_to_ptr.vmem [resolvable:$true] %s270_s20 }
  0x36   : > { %s1835_s29 = scalar_lea.hbm %s2078_s18, 1024  ;;  %p1837_p0 = pneg %p2082_p11 }
  0x37   : > { %p1836_p13 = scmp.ne.s32.totalorder %s2078_s18, %s1835_s29  ;;  %s1840_s15 = scalar_lea.hbm %s2334_s0, 2048 }
  0x38   : > { %p1841_p1 = scmp.lt.s32.totalorder %s2078_s18, %s2334_s0  ;;  %p1842_p2 = scmp.lt.s32.totalorder %s1840_s15, %s1835_s29 }
  0x39   : > { %p1838_p5 = pnand %p1837_p0, %p1836_p13 }
  0x3a   : > { %p1843_p6 = por %p1842_p2, %p1841_p1 }
  0x3b   : > { %p1839_p10 = pneg %p1838_p5 }
  0x3d   : > { %p1844_p12 = pnand %p1843_p6, %p1839_p10 }
  0x3f   : > { %1847 = shalt.err (!%p1844_p12)
}
  0x40   : > { %s1848_s13 = scalar_lea.vmem %s2080_s20, 1024  ;;  %s1937_s19 = smov [#allocation2]  }
  0x41   : > { %p1849_p7 = scmp.ne.s32.totalorder %s2080_s20, %s1848_s13  ;;  %s1853_s1 = sshll.u32 %s1937_s19, 4  ;;  %s1854_s1 = int_to_ptr.vmem [resolvable:$false] %s1853_s1 }
  0x42   : > { %s1855_s10 = scalar_lea.vmem %s1854_s1, 2048  ;;  %p1856_p5 = scmp.lt.s32.totalorder %s2080_s20, %s1854_s1 }
  0x43   : > { %p1851_p9 = pnand %p1849_p7, %p1837_p0  ;;  %p1857_p3 = scmp.lt.s32.totalorder %s1855_s10, %s1848_s13 }
  0x45   : > { %p1852_p13 = pneg %p1851_p9  ;;  %p1858_p4 = por %p1857_p3, %p1856_p5 }
  0x47   : > { %p1859_p8 = pnand %p1858_p4, %p1852_p13 }
  0x49   : > { %1862 = shalt.err (!%p1859_p8)
}
  0x4a   : > { %s1938_s29 = smov 128   ;;  %s1939_s14 = smov 8  }
  0x4b   : > { %1684 = dma.hbm_to_vmem [thread:$0]  (!%p2082_p11), %s2078_s18, 1024, %s2080_s20, %s2086_s22, %s1938_s29, %s1938_s29, %s1939_s14  }
  0x4c   : > { %p2355_p0 = scmp.ne.s32.totalorder %s2349_s9, 0 }
  0x4d   : > { %s2110_s15 = sand.u32 (!%p2355_p0), 1, %s1923_s25   ;;  %p2356_p4 = scmp.ne.s32.totalorder (!%p2355_p0), %s2347_s30, 0 }
  0x4e   : > { %282 = sbr.rel (%p2355_p0) target bundleno = 596 (0x254), region = 48  ;;  %s1444_s1 = sshll.u32 (!%p2355_p0), %s2110_s15, 6 }
  0x4f   : > { %s285_s16 = scalar_lea.sflag (!%p2355_p0), [#allocation3], %s2110_s15  ;;  %s2116_s17 = scalar_lea.vmem (!%p2355_p0), [#allocation2], %s1444_s1 }
  0x53   : > { %1906 = dma.done.wait (%p2356_p4), %s285_s16, 1024  }
  0x54   : > { %1908 = vsyncadd (%p2356_p4), %s285_s16, 4294966272  ;;  %p2357_p8 = scmp.eq.s32.totalorder %s2004_s28, 0 }
  0x56   : > { %1910 = dma.done.wait (%p2357_p8), [#allocation6], 6144   ;;  %p2358_p3 = pmov %p2357_p8 }
  0x57   : > { %v1735_v0 = vld [vmem:[#allocation5 + $0x78] sm:$0xff]   ;;  %v1738_v3 = vld [vmem:[#allocation5 + $0x70] sm:$0xff]   ;;  %v1741_v6 = vld [vmem:[#allocation5 + $0x68] sm:$0xff]   ;;  %vm379_vm0 = vsmask.f32 256  ;;  %vm378_vm1 = vcmask 1040384  }
  0x58   : > { %1912 = vsyncadd (%p2358_p3), [#allocation6], 4294961152  ;;  %v1736_v1 = vld [vmem:[#allocation5 + $0xb8] sm:$0xff]   ;;  %1510 = vmatprep.subr.bf16.mxu0 %v1735_v0  ;;  %v1739_v4 = vld [vmem:[#allocation5 + $0xb0] sm:$0xff]   ;;  %vm450_vm2 = vcmask 1046528   ;;  %s2256_s10 = scalar_lea.vmem [#allocation8], %s1444_s1 }
  0x59   : > { %v1737_v2 = vld [vmem:[#allocation5 + $0x38] sm:$0xff]   ;;  %1614 = vmatprep.subr.bf16.mxu1 %v1736_v1  ;;  %v1740_v5 = vld [vmem:[#allocation5 + $0x30] sm:$0xff]   ;;  %v1742_v7 = vld [vmem:[#allocation5 + $0xa8] sm:$0xff]   ;;  %vm389_vm3 = vsmask.f32 7424  ;;  %s1509_s29 = sshll.u32 %s2004_s28, 10 }
  0x5a   : > { %1511 = vmatpush3.bf16.msra.mxu0 %v1737_v2  ;;  %1615 = vmatpush3.bf16.msra.mxu1 %v1736_v1  ;;  %v1743_v8 = vld [vmem:[#allocation5 + $0x28] sm:$0xff]   ;;  %v1744_v9 = vld [vmem:[#allocation5 + $0x60] sm:$0xff]   ;;  %v1747_v12 = vld [vmem:[#allocation5 + $0x58] sm:$0xff]   ;;  %s1342_s14 = sshll.u32 %s2256_s10, 4  ;;  %s1328_s30 = scalar_lea.sflag [#allocation4], %s2110_s15  ;;  %s2290_s14 = int_to_ptr.vmem [resolvable:$true] %s1342_s14 }
  0x5b   : > { %1512 = vmatprep.subr.bf16.mxu0 %v1738_v3  ;;  %1616 = vmatprep.subr.bf16.mxu1 %v1739_v4  ;;  %v1745_v10 = vld [vmem:[#allocation5 + $0xa0] sm:$0xff]   ;;  %v1748_v13 = vld [vmem:[#allocation5 + $0x98] sm:$0xff]   ;;  %v1750_v15 = vld [vmem:[#allocation5 + $0x50] sm:$0xff]   ;;  %s1863_s9 = scalar_lea.vmem %s2290_s14, 1024  ;;  %p2361_p10 = scmp.ne.s32.totalorder %s2353_s11, 0 }
  0x5c   : > { %v1746_v11 = vld [vmem:[#allocation5 + $0x20] sm:$0xff]   ;;  %v1749_v14 = vld [vmem:[#allocation5 + $0x18] sm:$0xff]   ;;  %v1751_v16 = vld [vmem:[#allocation5 + $0x90] sm:$0xff]   ;;  %p1864_p11 = scmp.ne.s32.totalorder %s2290_s14, %s1863_s9  ;;  %s1940_s28 = smov [#allocation8]  }
  0x5d   : > { %v1752_v17 = vld [vmem:[#allocation5 + $0x10] sm:$0xff]   ;;  %v1753_v18 = vld [vmem:[#allocation5 + $0x48] sm:$0xff]   ;;  %v1756_v21 = vld [vmem:[#allocation5 + $0x40] sm:$0xff]   ;;  %s1867_s18 = sshll.u32 %s1940_s28, 4  ;;  %s1868_s18 = int_to_ptr.vmem [resolvable:$false] %s1867_s18 }
  0x5e   : > { %1513 = vmatpush3.bf16.msra.mxu0 %v1740_v5  ;;  %1617 = vmatpush3.bf16.msra.mxu1 %v1739_v4  ;;  %v1754_v19 = vld [vmem:[#allocation5 + $0x88] sm:$0xff]   ;;  %v1757_v22 = vld [vmem:[#allocation5 + $0x80] sm:$0xff]   ;;  %v2133_v25 = vld [vmem:[%s2116_s17 + $0x10] sm:$0xff]  ;;  %p1865_p1 = pnand %p1864_p11, %p2361_p10  ;;  %s1869_s20 = scalar_lea.vmem %s1868_s18, 2048 }
  0x5f   : > { %1514 = vmatprep.subr.bf16.mxu0 %v1741_v6  ;;  %1618 = vmatprep.subr.bf16.mxu1 %v1742_v7  ;;  %v1755_v20 = vld [vmem:[#allocation5 + $0x8] sm:$0xff]   ;;  %v2127_v23 = vld [vmem:[%s2116_s17] sm:$0xff]  ;;  %v2138_v27 = vld [vmem:[%s2116_s17 + $0x18] sm:$0xff]  ;;  %p1870_p6 = scmp.lt.s32.totalorder %s2290_s14, %s1868_s18  ;;  %p1871_p12 = scmp.lt.s32.totalorder %s1869_s20, %s1863_s9 }
  0x60   : > { %v2130_v24 = vld [vmem:[%s2116_s17 + $0x8] sm:$0xff]  ;;  %v2141_v28 = vld [vmem:[%s2116_s17 + $0x20] sm:$0xff]  ;;  %v339_v30 = vpack.c.bf16 %v2138_v27, %v2133_v25  ;;  %v2151_v32 = vld [vmem:[%s2116_s17 + $0x30] sm:$0xff]  ;;  %p1866_p2 = pneg %p1865_p1 }
  0x61   : > { %v338_v26 = vpack.c.bf16 %v2130_v24, %v2127_v23  ;;  %v2144_v29 = vld [vmem:[%s2116_s17 + $0x28] sm:$0xff]  ;;  %v2154_v33 = vld [vmem:[%s2116_s17 + $0x38] sm:$0xff]  ;;  %v1758_v37 = vld [vmem:[#allocation5] sm:$0xff]   ;;  %s2288_s17 = scalar_lea.hbm %s2341_s7, %s1509_s29  ;;  %p1872_p7 = por %p1871_p12, %p1870_p6 }
  0x62   : > { %1515 = vmatpush3.bf16.msra.mxu0 %v1743_v8  ;;  %1619 = vmatpush3.bf16.msra.mxu1 %v1742_v7  ;;  %v340_v31 = vpack.c.bf16 %v2144_v29, %v2141_v28  ;;  %v341_v36 = vpack.c.bf16 %v2154_v33, %v2151_v32  ;;  %v350_v38 = vshrl.u32 %v339_v30, 16  ;;  %v353_v39 = vshll.u32 %v339_v30, 16  ;;  %vm2160_vm4 = vmand %vm378_vm1, %vm379_vm0 }
  0x63   : > { %1516 = vmatprep.subr.bf16.mxu0 %v1744_v9  ;;  %1620 = vmatprep.subr.bf16.mxu1 %v1745_v10  ;;  %v343_v34 = vshrl.u32 %v338_v26, 16  ;;  %v346_v35 = vshll.u32 %v338_v26, 16  ;;  %p1873_p9 = pnand %p1872_p7, %p1866_p2 }
  0x64   : > { %v357_v40 = vshrl.u32 %v340_v31, 16  ;;  %v360_v42 = vshll.u32 %v340_v31, 16  ;;  %v364_v43 = vshrl.u32 %v341_v36, 16  ;;  %v367_v44 = vshll.u32 %v341_v36, 16 }
  0x65   : > { %v345_v41 = vrot.slane %v343_v34, 7  ;;  %v352_v46 = vrot.slane %v350_v38, 7 }
  0x66   : > { %1517 = vmatpush3.bf16.msra.mxu0 %v1746_v11  ;;  %1621 = vmatpush3.bf16.msra.mxu1 %v1745_v10  ;;  %v359_v47 = vrot.slane %v357_v40, 7  ;;  %v366_v50 = vrot.slane %v364_v43, 7 }
  0x67   : > { %1518 = vmatprep.subr.bf16.mxu0 %v1747_v12  ;;  %1622 = vmatprep.subr.bf16.mxu1 %v1748_v13  ;;  %v348_v48 = vor.u32 %v346_v35, %v345_v41  ;;  %v385_v49 = vsel %vm2160_vm4, %v345_v41, 0  ;;  %v355_v53 = vor.u32 %v353_v39, %v352_v46  ;;  %v386_v54 = vsel %vm2160_vm4, %v352_v46, 0  ;;  %v1759_v46 = vld [vmem:[#allocation7 + $0x78] sm:$0xff]  }
  0x68   : > { %v398_v51 = vshll.u32 %v385_v49, 16  ;;  %v452_v52 = vrot.slane %v385_v49, 1  ;;  %v455_v56 = vrot.slane %v386_v54, 1  ;;  %v410_v57 = vshll.u32 %v386_v54, 16  ;;  %v1761_v49 = vld [vmem:[#allocation7 + $0x70] sm:$0xff]   ;;  %v1768_v54 = vld [vmem:[#allocation7 + $0xa8] sm:$0xff]  }
  0x69   : > { %v381_v55 = vsel %vm2160_vm4, 0, %v348_v48  ;;  %v362_v58 = vor.u32 %v360_v42, %v359_v47  ;;  %v382_v63 = vsel %vm2160_vm4, 0, %v355_v53  ;;  %v387_v2 = vsel %vm2160_vm4, %v359_v47, 0  ;;  %v1760_v47 = vld [vmem:[#allocation7 + $0x38] sm:$0xff]   ;;  %v1766_v53 = vld [vmem:[#allocation7 + $0x28] sm:$0xff]  }
  0x6a   : > { %1519 = vmatpush3.bf16.msra.mxu0 %v1749_v14  ;;  %1623 = vmatpush3.bf16.msra.mxu1 %v1748_v13  ;;  %v391_v59 = vshrl.u32 %v381_v55, 16  ;;  %v393_v60 = vshll.u32 %v381_v55, 16  ;;  %v400_v61 = vrot.slane %v398_v51, 1  ;;  %v451_v62 = vrot.slane %v381_v55, 1  ;;  %v1762_v48 = vld [vmem:[#allocation7 + $0xb8] sm:$0xff]   ;;  %v1765_v51 = vld [vmem:[#allocation7 + $0xb0] sm:$0xff]  }
  0x6b   : > { %1520 = vmatprep.subr.bf16.mxu0 %v1750_v15  ;;  %1624 = vmatprep.subr.bf16.mxu1 %v1751_v16  ;;  %v412_v0 = vrot.slane %v410_v57, 1  ;;  %v383_v1 = vsel %vm2160_vm4, 0, %v362_v58  ;;  %v454_v5 = vrot.slane %v382_v63, 1  ;;  %v403_v6 = vshrl.u32 %v382_v63, 16  ;;  %v1771_v57 = vld [vmem:[#allocation7 + $0xa0] sm:$0xff]   ;;  %v1770_v58 = vld [vmem:[#allocation7 + $0x58] sm:$0xff]  }
  0x6c   : > { %v395_v3 = vrot.slane %v393_v60, 1  ;;  %v453_v4 = vsel %vm450_vm2, %v451_v62, %v452_v52  ;;  %v405_v7 = vshll.u32 %v382_v63, 16  ;;  %v457_v8 = vrot.slane %v383_v1, 1  ;;  %v1764_v52 = vld [vmem:[#allocation7 + $0x68] sm:$0xff]   ;;  %v1774_v60 = vld [vmem:[#allocation7 + $0x98] sm:$0xff]   ;;  %v1775_v62 = vld [vmem:[#allocation7 + $0x10] sm:$0xff]  }
  0x6d   : > { %1630 = vmatprep.mubr.bf16.mxu1 %v453_v4  ;;  %v458_v9 = vrot.slane %v387_v2, 1  ;;  %v369_v10 = vor.u32 %v367_v44, %v366_v50  ;;  %v456_v12 = vsel %vm450_vm2, %v454_v5, %v455_v56  ;;  %v388_v13 = vsel %vm2160_vm4, %v366_v50, 0  ;;  %v1763_v50 = vld [vmem:[#allocation7 + $0x30] sm:$0xff]   ;;  %v1769_v56 = vld [vmem:[#allocation7 + $0x20] sm:$0xff]  }
  0x6e   : > { %1521 = vmatpush3.bf16.msra.mxu0 %v1752_v17  ;;  %1625 = vmatpush3.bf16.msra.mxu1 %v1751_v16  ;;  %v396_v11 = vor.u32 %v395_v3, %v391_v59  ;;  %v415_v14 = vshrl.u32 %v383_v1, 16  ;;  %v407_v15 = vrot.slane %v405_v7, 1  ;;  %v434_v35 = vshll.u32 %v388_v13, 16  ;;  %v1772_v59 = vld [vmem:[#allocation7 + $0x18] sm:$0xff]   ;;  %v1779_v3 = vld [vmem:[#allocation7 + $0x40] sm:$0xff]  }
  0x6f   : > { %1522 = vmatprep.subr.bf16.mxu0 %v1753_v18  ;;  %1626 = vmatprep.subr.bf16.mxu1 %v1754_v19  ;;  %v459_v16 = vsel %vm450_vm2, %v457_v8, %v458_v9  ;;  %v384_v17 = vsel %vm2160_vm4, 0, %v369_v10  ;;  %v461_v18 = vrot.slane %v388_v13, 1  ;;  %v1781_v4 = vld [vmem:[#allocation7] sm:$0xff]  }
  0x70   : > { %v408_v26 = vor.u32 %v407_v15, %v403_v6  ;;  %v427_v30 = vshrl.u32 %v384_v17, 16  ;;  %v429_v31 = vshll.u32 %v384_v17, 16  ;;  %v436_v43 = vrot.slane %v434_v35, 1  ;;  %v1782_v5 = vld [vmem:[#allocation7 + $0x80] sm:$0xff]  }
  0x72   : > { %1523 = vmatpush3.bf16.msra.mxu0 %v1755_v20  ;;  %1627 = vmatpush3.bf16.msra.mxu1 %v1754_v19  ;;  %v401_v19 = vsel %vm389_vm3, %v396_v11, %v400_v61  ;;  %v460_v20 = vrot.slane %v384_v17, 1  ;;  %v413_v36 = vsel %vm389_vm3, %v408_v26, %v412_v0  ;;  %v431_v38 = vrot.slane %v429_v31, 1  ;;  %v1773_v61 = vld [vmem:[#allocation7 + $0x50] sm:$0xff]   ;;  %v1776_v0 = vld [vmem:[#allocation7 + $0x48] sm:$0xff]   ;;  %v2191_v11 = vld [vmem:[%s2336_s2] ss:$0 sm:$0xff] }
  0x73   : > { %1524 = vmatprep.subr.bf16.mxu0 %v1756_v21  ;;  %1628 = vmatprep.subr.bf16.mxu1 %v1757_v22  ;;  %v417_v21 = vshll.u32 %v383_v1, 16 }
  0x74   : > { %691 = vmatprep.mubr.bf16.mxu0 %v401_v19  ;;  %v462_v39 = vsel %vm450_vm2, %v460_v20, %v461_v18  ;;  %v432_v42 = vor.u32 %v431_v38, %v427_v30  ;;  %v2197_v18 = vld [vmem:[%s2337_s3] ss:$0 sm:$0xff] }
  0x75   : > { %v419_v34 = vrot.slane %v417_v21, 1 }
  0x76   : > { %1525 = vmatpush3.bf16.msra.mxu0 %v1758_v37  ;;  %1629 = vmatpush3.bf16.msra.mxu1 %v1757_v22  ;;  %v422_v22 = vshll.u32 %v387_v2, 16  ;;  %v437_v44 = vsel %vm389_vm3, %v432_v42, %v436_v43  ;;  %v1780_v2 = vld [vmem:[#allocation7 + $0x88] sm:$0xff]  }
  0x77   : > { %v420_v40 = vor.u32 %v419_v34, %v415_v14  ;;  %1562 = vmatprep.subr.bf16.mxu0 %v1759_v46  ;;  %1638 = vmatprep.subr.bf16.mxu1 %v1762_v48 }
  0x78   : > { %v424_v37 = vrot.slane %v422_v22, 1 }
  0x79   : > { %1631 = vmatmul.mubr.bf16.vlgmr.msra.gmra.mxu1 %v456_v12  ;;  %692 = vmatmul.mubr.bf16.vlgmr.msra.gmra.mxu0 %v381_v55  ;;  %v1767_v55 = vld [vmem:[#allocation7 + $0x60] sm:$0xff]  }
  0x7a   : > { %1634 = vmatprep.mubr.bf16.mxu1 %v459_v16  ;;  %699 = vmatprep.mubr.bf16.mxu0 %v413_v36  ;;  %v425_v41 = vsel %vm389_vm3, %v420_v40, %v424_v37 }
  0x7b   : > { %1563 = vmatpush3.bf16.msra.mxu0 %v1760_v47  ;;  %1639 = vmatpush3.bf16.msra.mxu1 %v1762_v48 }
  0x7c   : > { %1564 = vmatprep.subr.bf16.mxu0 %v1761_v49  ;;  %1640 = vmatprep.subr.bf16.mxu1 %v1765_v51 }
  0x7f   : > { %1565 = vmatpush3.bf16.msra.mxu0 %v1763_v50  ;;  %1641 = vmatpush3.bf16.msra.mxu1 %v1765_v51 }
  0x80   : > { %1566 = vmatprep.subr.bf16.mxu0 %v1764_v52  ;;  %1642 = vmatprep.subr.bf16.mxu1 %v1768_v54 }
  0x81   : > { %1635 = vmatmul.mubr.bf16.gmra.mxu1 %v462_v39  ;;  %700 = vmatmul.mubr.bf16.gmra.mxu0 %v382_v63  ;;  %v1777_v63 = vld [vmem:[#allocation7 + $0x90] sm:$0xff]  }
  0x82   : > { %707 = vmatprep.mubr.bf16.mxu0 %v425_v41 }
  0x83   : > { %1567 = vmatpush3.bf16.msra.mxu0 %v1766_v53  ;;  %1643 = vmatpush3.bf16.msra.mxu1 %v1768_v54 }
  0x84   : > { %1568 = vmatprep.subr.bf16.mxu0 %v1767_v55  ;;  %1644 = vmatprep.subr.bf16.mxu1 %v1771_v57 }
  0x87   : > { %1569 = vmatpush3.bf16.msra.mxu0 %v1769_v56  ;;  %1645 = vmatpush3.bf16.msra.mxu1 %v1771_v57 }
  0x88   : > { %1570 = vmatprep.subr.bf16.mxu0 %v1770_v58  ;;  %1646 = vmatprep.subr.bf16.mxu1 %v1774_v60 }
  0x89   : > { %708 = vmatmul.mubr.bf16.gmra.mxu0 %v383_v1  ;;  %v1778_v1 = vld [vmem:[#allocation7 + $0x8] sm:$0xff]  }
  0x8a   : > { %715 = vmatprep.mubr.bf16.mxu0 %v437_v44 }
  0x8b   : > { %1571 = vmatpush3.bf16.msra.mxu0 %v1772_v59  ;;  %1647 = vmatpush3.bf16.msra.mxu1 %v1774_v60 }
  0x8c   : > { %1572 = vmatprep.subr.bf16.mxu0 %v1773_v61  ;;  %1648 = vmatprep.subr.bf16.mxu1 %v1777_v63 }
  0x8f   : > { %1573 = vmatpush3.bf16.msra.mxu0 %v1775_v62  ;;  %1649 = vmatpush3.bf16.msra.mxu1 %v1777_v63 }
  0x90   : > { %1574 = vmatprep.subr.bf16.mxu0 %v1776_v0  ;;  %1650 = vmatprep.subr.bf16.mxu1 %v1780_v2 }
  0x91   : > { %716 = vmatmul.mubr.bf16.gmra.mxu0 %v384_v17 }
  0x93   : > { %1575 = vmatpush3.bf16.msra.mxu0 %v1778_v1  ;;  %1651 = vmatpush3.bf16.msra.mxu1 %v1780_v2 }
  0x94   : > { %1576 = vmatprep.subr.bf16.mxu0 %v1779_v3  ;;  %1652 = vmatprep.subr.bf16.mxu1 %v1782_v5 }
  0x97   : > { %1577 = vmatpush3.bf16.msra.mxu0 %v1781_v4  ;;  %1653 = vmatpush3.bf16.msra.mxu1 %v1782_v5 }
 0x139   : > { %v1632_v6 = vpop.f32.mrf.mxu1  ;;  %v1526_v7 = vpop.f32.mrf.mxu0 }
 0x13b   : > { %v758_v8 = vpop.f32.mrf.mxu1  ;;  %v1527_v9 = vpop.f32.mrf.mxu0 }
 0x13c   : > { %v1528_v10 = vadd.f32 %v1527_v9, %v1526_v7 }
 0x13d   : > { %v1529_v12 = vpop.f32.mrf.mxu0  ;;  %v1633_v13 = vpop.f32.mrf.mxu1 }
 0x13e   : > { %v759_v14 = vadd.f32 %v1528_v10, %v758_v8 }
 0x13f   : > { %v1530_v15 = vpop.f32.mrf.mxu0  ;;  %v761_v19 = vpop.f32.mrf.mxu1 }
 0x140   : > { %v796_v16 = vmul.f32 %v2191_v11, %v759_v14  ;;  %v1531_v17 = vadd.f32 %v1530_v15, %v1529_v12 }
 0x141   : > { %v1532_v20 = vpop.f32.mrf.mxu0  ;;  %v1636_v35 = vpop.f32.mrf.mxu1 }
 0x142   : > { %v762_v21 = vadd.f32 %v1531_v17, %v761_v19  ;;  %v811_v26 = vadd.f32 %v2197_v18, %v796_v16 }
 0x143   : > { %v1533_v22 = vpop.f32.mrf.mxu0  ;;  %v774_v43 = vpop.f32.mrf.mxu1 }
 0x144   : > { %v797_v30 = vmul.f32 %v2191_v11, %v762_v21  ;;  %v1534_v31 = vadd.f32 %v1533_v22, %v1532_v20  ;;  %v819_v39 = vmax.f32 %v811_v26, 0.0 }
 0x145   : > { %v1535_v34 = vpop.f32.mrf.mxu0  ;;  %v1637_v52 = vpop.f32.mrf.mxu1 }
 0x146   : > { %v812_v36 = vadd.f32 %v2197_v18, %v797_v30  ;;  %v767_v37 = vadd.f32 %v1632_v6, %v1534_v31 }
 0x147   : > { %v1536_v38 = vpop.f32.mrf.mxu0  ;;  %v777_v2 = vpop.f32.mrf.mxu1 }
 0x148   : > { %v820_v40 = vmax.f32 %v812_v36, 0.0  ;;  %v798_v41 = vmul.f32 %v2191_v11, %v767_v37  ;;  %v1537_v42 = vadd.f32 %v1536_v38, %v1535_v34 }
 0x149   : > { %v1538_v44 = vpop.f32.mrf.mxu0 }
 0x14a   : > { %v827_v46 = vpack.c.bf16 %v820_v40, %v819_v39  ;;  %v770_v47 = vadd.f32 %v1633_v13, %v1537_v42  ;;  %v813_v48 = vadd.f32 %v2197_v18, %v798_v41 }
 0x14b   : > { %v1539_v49 = vpop.f32.mrf.mxu0 }
 0x14c   : > { %v832_v50 = vshrl.u32 %v827_v46, 16  ;;  %v799_v51 = vmul.f32 %v2191_v11, %v770_v47  ;;  %v1540_v53 = vadd.f32 %v1539_v49, %v1538_v44  ;;  %v835_v55 = vshll.u32 %v827_v46, 16 }
 0x14d   : > { %v1541_v54 = vpop.f32.mrf.mxu0  ;;  %v821_v58 = vmax.f32 %v813_v48, 0.0 }
 0x14e   : > { %v814_v56 = vadd.f32 %v2197_v18, %v799_v51  ;;  %v834_v57 = vrot.slane %v832_v50, 7  ;;  %v775_v59 = vadd.f32 %v1540_v53, %v774_v43 }
 0x14f   : > { %v1542_v60 = vpop.f32.mrf.mxu0 }
 0x150   : > { %v822_v61 = vmax.f32 %v814_v56, 0.0  ;;  %v1543_v62 = vadd.f32 %v1542_v60, %v1541_v54  ;;  %v837_v63 = vor.u32 %v835_v55, %v834_v57  ;;  %v871_v0 = vsel %vm2160_vm4, %v834_v57, 0 }
 0x151   : > { %v800_v1 = vmul.f32 %v2191_v11, %v775_v59  ;;  %v1544_v3 = vpop.f32.mrf.mxu0  ;;  %v936_v7 = vrot.slane %v871_v0, 1  ;;  %v883_v13 = vshll.u32 %v871_v0, 16 }
 0x152   : > { %v828_v4 = vpack.c.bf16 %v822_v61, %v821_v58  ;;  %v778_v5 = vadd.f32 %v1543_v62, %v777_v2  ;;  %v867_v6 = vsel %vm2160_vm4, 0, %v837_v63 }
 0x153   : > { %v815_v8 = vadd.f32 %v2197_v18, %v800_v1  ;;  %v1545_v9 = vpop.f32.mrf.mxu0  ;;  %v935_v10 = vrot.slane %v867_v6, 1  ;;  %v878_v12 = vshll.u32 %v867_v6, 16  ;;  %v876_v20 = vshrl.u32 %v867_v6, 16 }
 0x154   : > { %v839_v14 = vshrl.u32 %v828_v4, 16  ;;  %v801_v15 = vmul.f32 %v2191_v11, %v778_v5  ;;  %v1546_v16 = vadd.f32 %v1545_v9, %v1544_v3  ;;  %v842_v26 = vshll.u32 %v828_v4, 16 }
 0x155   : > { %v1547_v17 = vpop.f32.mrf.mxu0  ;;  %v937_v19 = vsel %vm450_vm2, %v935_v10, %v936_v7  ;;  %v880_v21 = vrot.slane %v878_v12, 1  ;;  %v823_v34 = vmax.f32 %v815_v8, 0.0  ;;  %v885_v38 = vrot.slane %v883_v13, 1 }
 0x156   : > { %v841_v22 = vrot.slane %v839_v14, 7  ;;  %v816_v30 = vadd.f32 %v2197_v18, %v801_v15  ;;  %v783_v31 = vadd.f32 %v1636_v35, %v1546_v16  ;;  %1654 = vmatprep.mubr.bf16.mxu1 %v937_v19 }
 0x157   : > { %v1548_v36 = vpop.f32.mrf.mxu0  ;;  %v881_v37 = vor.u32 %v880_v21, %v876_v20 }
 0x158   : > { %v844_v39 = vor.u32 %v842_v26, %v841_v22  ;;  %v824_v40 = vmax.f32 %v816_v30, 0.0  ;;  %v802_v41 = vmul.f32 %v2191_v11, %v783_v31  ;;  %v1549_v42 = vadd.f32 %v1548_v36, %v1547_v17 }
 0x159   : > { %v886_v43 = vsel %vm389_vm3, %v881_v37, %v885_v38  ;;  %v872_v44 = vsel %vm2160_vm4, %v841_v22, 0 }
 0x15a   : > { %v829_v46 = vpack.c.bf16 %v824_v40, %v823_v34  ;;  %v786_v47 = vadd.f32 %v1637_v52, %v1549_v42  ;;  %1175 = vmatprep.mubr.bf16.mxu0 %v886_v43  ;;  %v868_v35 = vsel %vm2160_vm4, 0, %v844_v39  ;;  %v939_v49 = vrot.slane %v872_v44, 1 }
 0x15b   : > { %1176 = vmatmul.mubr.bf16.vlgmr.msra.gmra.mxu0 %v867_v6  ;;  %v938_v48 = vrot.slane %v868_v35, 1  ;;  %v890_v50 = vshll.u32 %v868_v35, 16  ;;  %v817_v51 = vadd.f32 %v2197_v18, %v802_v41  ;;  %v895_v54 = vshll.u32 %v872_v44, 16 }
 0x15c   : > { %v803_v53 = vmul.f32 %v2191_v11, %v786_v47  ;;  %v888_v56 = vshrl.u32 %v868_v35, 16  ;;  %v846_v58 = vshrl.u32 %v829_v46, 16  ;;  %v849_v59 = vshll.u32 %v829_v46, 16  ;;  %v2241_v47 = vld [vmem:[%s2339_s5] ss:$0 sm:$0xff] }
 0x15d   : > { %v940_v55 = vsel %vm450_vm2, %v938_v48, %v939_v49  ;;  %v892_v57 = vrot.slane %v890_v50, 1  ;;  %v897_v61 = vrot.slane %v895_v54, 1  ;;  %v825_v63 = vmax.f32 %v817_v51, 0.0  ;;  %v2246_v49 = vld [vmem:[%s2340_s6] ss:$0 sm:$0xff] }
 0x15e   : > { %v818_v52 = vadd.f32 %v2197_v18, %v803_v53  ;;  %1655 = vmatmul.mubr.bf16.vlgmr.msra.gmra.mxu1 %v940_v55  ;;  %v848_v62 = vrot.slane %v846_v58, 7 }
 0x15f   : > { %v893_v60 = vor.u32 %v892_v57, %v888_v56 }
 0x160   : > { %v826_v0 = vmax.f32 %v818_v52, 0.0  ;;  %v851_v2 = vor.u32 %v849_v59, %v848_v62  ;;  %v873_v11 = vsel %vm2160_vm4, %v848_v62, 0 }
 0x161   : > { %v898_v1 = vsel %vm389_vm3, %v893_v60, %v897_v61  ;;  %v942_v5 = vrot.slane %v873_v11, 1  ;;  %v907_v7 = vshll.u32 %v873_v11, 16 }
 0x162   : > { %v830_v3 = vpack.c.bf16 %v826_v0, %v825_v63  ;;  %1183 = vmatprep.mubr.bf16.mxu0 %v898_v1  ;;  %v869_v4 = vsel %vm2160_vm4, 0, %v851_v2 }
 0x163   : > { %1184 = vmatmul.mubr.bf16.gmra.mxu0 %v868_v35  ;;  %v941_v18 = vrot.slane %v869_v4, 1  ;;  %v902_v6 = vshll.u32 %v869_v4, 16  ;;  %v900_v10 = vshrl.u32 %v869_v4, 16  ;;  %v909_v16 = vrot.slane %v907_v7, 1 }
 0x164   : > { %v853_v8 = vshrl.u32 %v830_v3, 16  ;;  %v856_v13 = vshll.u32 %v830_v3, 16 }
 0x165   : > { %v943_v9 = vsel %vm450_vm2, %v941_v18, %v942_v5  ;;  %v904_v12 = vrot.slane %v902_v6, 1 }
 0x166   : > { %1658 = vmatprep.mubr.bf16.mxu1 %v943_v9  ;;  %v855_v14 = vrot.slane %v853_v8, 7 }
 0x167   : > { %v905_v15 = vor.u32 %v904_v12, %v900_v10 }
 0x168   : > { %v858_v17 = vor.u32 %v856_v13, %v855_v14  ;;  %v874_v19 = vsel %vm2160_vm4, %v855_v14, 0 }
 0x169   : > { %v910_v20 = vsel %vm389_vm3, %v905_v15, %v909_v16  ;;  %v945_v26 = vrot.slane %v874_v19, 1  ;;  %v919_v31 = vshll.u32 %v874_v19, 16 }
 0x16a   : > { %1191 = vmatprep.mubr.bf16.mxu0 %v910_v20  ;;  %v870_v21 = vsel %vm2160_vm4, 0, %v858_v17 }
 0x16b   : > { %1192 = vmatmul.mubr.bf16.gmra.mxu0 %v869_v4  ;;  %v944_v22 = vrot.slane %v870_v21, 1  ;;  %v914_v30 = vshll.u32 %v870_v21, 16  ;;  %v912_v36 = vshrl.u32 %v870_v21, 16  ;;  %v921_v39 = vrot.slane %v919_v31, 1 }
 0x16d   : > { %v946_v34 = vsel %vm450_vm2, %v944_v22, %v945_v26  ;;  %v916_v37 = vrot.slane %v914_v30, 1 }
 0x16e   : > { %1659 = vmatmul.mubr.bf16.gmra.mxu1 %v946_v34 }
 0x16f   : > { %v917_v38 = vor.u32 %v916_v37, %v912_v36 }
 0x171   : > { %v922_v40 = vsel %vm389_vm3, %v917_v38, %v921_v39 }
 0x172   : > { %1199 = vmatprep.mubr.bf16.mxu0 %v922_v40 }
 0x173   : > { %1200 = vmatmul.mubr.bf16.gmra.mxu0 %v870_v21 }
 0x21b   : > { %v1578_v41 = vpop.f32.mrf.mxu0 }
 0x21d   : > { %v1579_v42 = vpop.f32.mrf.mxu0 }
 0x21e   : > { %v1580_v45 = vadd.f32 %v1579_v42, %v1578_v41  ;;  %v1656_v43 = vpop.f32.mrf.mxu1 }
 0x21f   : > { %v1581_v44 = vpop.f32.mrf.mxu0 }
 0x220   : > { %v1242_v46 = vpop.f32.mrf.mxu1 }
 0x221   : > { %v1243_v35 = vadd.f32 %v1580_v45, %v1242_v46  ;;  %v1582_v48 = vpop.f32.mrf.mxu0 }
 0x222   : > { %v1583_v50 = vadd.f32 %v1582_v48, %v1581_v44  ;;  %v1657_v51 = vpop.f32.mrf.mxu1 }
 0x223   : > { %v1280_v53 = vmul.f32 %v2241_v47, %v1243_v35  ;;  %v1584_v54 = vpop.f32.mrf.mxu0 }
 0x224   : > { %v1245_v55 = vpop.f32.mrf.mxu1 }
 0x225   : > { %v1295_v56 = vadd.f32 %v2246_v49, %v1280_v53  ;;  %v1246_v57 = vadd.f32 %v1583_v50, %v1245_v55  ;;  %v1585_v58 = vpop.f32.mrf.mxu0 }
 0x226   : > { %v1586_v52 = vadd.f32 %v1585_v58, %v1584_v54 }
 0x227   : > { %v1303_v59 = vadd.f32 %v1295_v56, %v2127_v23  ;;  %v1281_v60 = vmul.f32 %v2241_v47, %v1246_v57  ;;  %v1587_v61 = vpop.f32.mrf.mxu0 }
 0x228   : > { %v1251_v62 = vadd.f32 %v1656_v43, %v1586_v52 }
 0x229   : > { %v1311_v63 = vmax.f32 %v1303_v59, 0.0  ;;  %v1296_v0 = vadd.f32 %v2246_v49, %v1281_v60  ;;  %v1588_v1 = vpop.f32.mrf.mxu0 }
 0x22a   : > { %v1282_v2 = vmul.f32 %v2241_v47, %v1251_v62  ;;  %v1589_v11 = vadd.f32 %v1588_v1, %v1587_v61 }
 0x22b   : > { %1319 = vst [vmem:[%s2256_s10] sm:$0xff] %v1311_v63  ;;  %v1304_v23 = vadd.f32 %v1296_v0, %v2130_v24  ;;  %v1590_v18 = vpop.f32.mrf.mxu0 }
 0x22c   : > { %v1297_v3 = vadd.f32 %v2246_v49, %v1282_v2  ;;  %v1254_v4 = vadd.f32 %v1657_v51, %v1589_v11 }
 0x22d   : > { %v1312_v5 = vmax.f32 %v1304_v23, 0.0  ;;  %v1591_v8 = vpop.f32.mrf.mxu0 }
 0x22e   : > { %v1305_v6 = vadd.f32 %v1297_v3, %v2133_v25  ;;  %v1283_v7 = vmul.f32 %v2241_v47, %v1254_v4  ;;  %v1592_v9 = vadd.f32 %v1591_v8, %v1590_v18  ;;  %v1660_v10 = vpop.f32.mrf.mxu1 }
 0x22f   : > { %1320 = vst [vmem:[%s2256_s10 + $0x8] sm:$0xff] %v1312_v5  ;;  %v1593_v14 = vpop.f32.mrf.mxu0 }
 0x230   : > { %v1313_v12 = vmax.f32 %v1305_v6, 0.0  ;;  %v1298_v13 = vadd.f32 %v2246_v49, %v1283_v7  ;;  %v1258_v15 = vpop.f32.mrf.mxu1 }
 0x231   : > { %v1259_v16 = vadd.f32 %v1592_v9, %v1258_v15  ;;  %v1594_v17 = vpop.f32.mrf.mxu0 }
 0x232   : > { %1321 = vst [vmem:[%s2256_s10 + $0x10] sm:$0xff] %v1313_v12  ;;  %v1306_v24 = vadd.f32 %v1298_v13, %v2138_v27  ;;  %v1595_v19 = vadd.f32 %v1594_v17, %v1593_v14  ;;  %v1661_v20 = vpop.f32.mrf.mxu1 }
 0x233   : > { %v1284_v21 = vmul.f32 %v2241_v47, %v1259_v16  ;;  %v1596_v22 = vpop.f32.mrf.mxu0 }
 0x234   : > { %v1314_v25 = vmax.f32 %v1306_v24, 0.0  ;;  %v1261_v26 = vpop.f32.mrf.mxu1 }
 0x235   : > { %v1299_v30 = vadd.f32 %v2246_v49, %v1284_v21  ;;  %v1262_v31 = vadd.f32 %v1595_v19, %v1261_v26  ;;  %v1597_v34 = vpop.f32.mrf.mxu0 }
 0x236   : > { %1322 = vst [vmem:[%s2256_s10 + $0x18] sm:$0xff] %v1314_v25  ;;  %v1598_v36 = vadd.f32 %v1597_v34, %v1596_v22 }
 0x237   : > { %v1307_v37 = vadd.f32 %v1299_v30, %v2141_v28  ;;  %v1285_v27 = vmul.f32 %v2241_v47, %v1262_v31  ;;  %v1599_v38 = vpop.f32.mrf.mxu0 }
 0x238   : > { %v1267_v39 = vadd.f32 %v1660_v10, %v1598_v36 }
 0x239   : > { %v1315_v40 = vmax.f32 %v1307_v37, 0.0  ;;  %v1300_v41 = vadd.f32 %v2246_v49, %v1285_v27  ;;  %v1600_v42 = vpop.f32.mrf.mxu0 }
 0x23a   : > { %v1286_v45 = vmul.f32 %v2241_v47, %v1267_v39  ;;  %v1601_v43 = vadd.f32 %v1600_v42, %v1599_v38 }
 0x23b   : > { %1323 = vst [vmem:[%s2256_s10 + $0x20] sm:$0xff] %v1315_v40  ;;  %v1308_v44 = vadd.f32 %v1300_v41, %v2144_v29 }
 0x23c   : > { %v1301_v28 = vadd.f32 %v2246_v49, %v1286_v45  ;;  %v1270_v46 = vadd.f32 %v1661_v20, %v1601_v43 }
 0x23d   : > { %v1316_v35 = vmax.f32 %v1308_v44, 0.0 }
 0x23e   : > { %v1309_v48 = vadd.f32 %v1301_v28, %v2151_v32  ;;  %v1287_v50 = vmul.f32 %v2241_v47, %v1270_v46 }
 0x23f   : > { %1324 = vst [vmem:[%s2256_s10 + $0x28] sm:$0xff] %v1316_v35 }
 0x240   : > { %v1317_v51 = vmax.f32 %v1309_v48, 0.0  ;;  %v1302_v53 = vadd.f32 %v2246_v49, %v1287_v50 }
 0x242   : > { %1325 = vst [vmem:[%s2256_s10 + $0x30] sm:$0xff] %v1317_v51  ;;  %v1310_v29 = vadd.f32 %v1302_v53, %v2154_v33 }
 0x244   : > { %v1318_v32 = vmax.f32 %v1310_v29, 0.0 }
 0x246   : > { %1326 = vst [vmem:[%s2256_s10 + $0x38] sm:$0xff] %v1318_v32 }
 0x247   : > { %1876 = shalt.err (!%p1873_p9)
}
 0x248   : > { %s1877_s21 = scalar_lea.hbm %s2288_s17, 1024  ;;  %s1881_s19 = scalar_lea.hbm %s2341_s7, 2048 }
 0x249   : > { %p1878_p13 = scmp.ne.s32.totalorder %s2288_s17, %s1877_s21  ;;  %p1882_p4 = scmp.lt.s32.totalorder %s2288_s17, %s2341_s7 }
 0x24a   : > { %p1883_p8 = scmp.lt.s32.totalorder %s1881_s19, %s1877_s21 }
 0x24b   : > { %p1879_p5 = pnand %p1878_p13, %p2361_p10 }
 0x24c   : > { %p1884_p3 = por %p1883_p8, %p1882_p4 }
 0x24d   : > { %p1880_p0 = pneg %p1879_p5 }
 0x24f   : > { %p1885_p11 = pnand %p1884_p3, %p1880_p0 }
 0x251   : > { %1888 = shalt.err (!%p1885_p11)
}
 0x252   : > { %s1941_s1 = smov 128   ;;  %s1942_s16 = smov 8  }
 0x253   : > { %1672 = dma.vmem_to_hbm [thread:$0]  (%p2361_p10), %s2290_s14, 1024, %s2288_s17, %s1328_s30, %s1941_s1, %s1941_s1, %s1942_s16  }
 0x254 PF: > { %s1357_s9 = sand.u32 1, %s1919_s24   ;;  %p2362_p1 = scmp.ne.s32.totalorder %s2348_s8, 0 }
 0x255   : > { %p2363_p2 = scmp.ge.s32.totalorder %s1931_s27, 2  ;;  %s1358_s28 = scalar_lea.sflag [#allocation4], %s1357_s9 }
 0x257   : > { %p1686_p6 = pnand %p2363_p2, %p2362_p1 }
 0x259   : > { %p1687_p12 = pneg %p1686_p6 }
 0x25b   : > { %1914 = dma.done.wait (%p1687_p12), %s1358_s28, 1024  }
 0x25c   : > { %1916 = vsyncadd (%p1687_p12), %s1358_s28, 4294966272  ;;  %p21_p7 = scmp.ge.s32.totalorder %s2055_s23, 4   ;;  %s2364_s24 = smov %s1923_s25 }
 0x25d   : > { %s2365_s25 = smov %s1927_s26  ;;  %s2366_s26 = smov %s2071_s12 }
 0x25e   : > { %s2367_s27 = smov %s2055_s23  ;;  %23 = sbr.rel (!%p21_p7) target bundleno = 8 (0x8), region = 101 }
 0x263   :  { %1363 = vsyncpa [#allocation3], 1 }
 0x264   :  { %1365 = vsyncpa [#allocation3 + $0x1], 1 }
 0x265   :  { %1366 = vsyncpa [#allocation6], 1 }
 0x266   :  { %1367 = vsyncpa [#allocation4], 1 }
 0x267   :  { %1369 = vsyncpa [#allocation4 + $0x1], 1 }

</bundles_post_ra>
